<compile_context>
chip_gen: v7x
topology: tpu7x:2x2x1
jax: 0.10.0
libtpu: 0.0.40
codegen_flags: <defaults>
</compile_context>

<pallas_src>
import functools

import jax
import jax.numpy as jnp
from jax.experimental import pallas as pl
from jax.experimental.pallas import tpu as pltpu


def _weightnet_kernel(x_ref, w1_ref, b1_ref, w2_ref, b2_ref, w3_ref, b3_ref, o_ref):
    # x_ref: (Cin, T)  — points on lanes, channels on sublanes.
    # wK_ref: (C_out_k, C_in_k)  (already transposed for left-multiplication).
    # bK_ref: (C_out_k, 1)       (broadcasts over the lane/point axis).
    x = x_ref[...]
    cin = x.shape[0]

    if cin <= 8:
        # Tiny contraction (Cin=3): unrolled VPU broadcast multiply-adds.
        w1 = w1_ref[...]                              # (H1, Cin)
        h = w1[:, 0:1] * x[0:1, :]                    # (H1, T)
        for c in range(1, cin):
            h = h + w1[:, c:c + 1] * x[c:c + 1, :]
    else:
        h = jnp.dot(w1_ref[...], x, preferred_element_type=jnp.float32)
    h = jnp.maximum(h + b1_ref[...], 0.0)

    # Layers 2/3: lane-dense (C, T) MXU matmuls with f32 accumulation.
    h = jnp.maximum(
        jnp.dot(w2_ref[...], h, preferred_element_type=jnp.float32) + b2_ref[...],
        0.0)
    h = jnp.maximum(
        jnp.dot(w3_ref[...], h, preferred_element_type=jnp.float32) + b3_ref[...],
        0.0)
    o_ref[...] = h.astype(o_ref.dtype)


@functools.partial(jax.jit, static_argnames=("tile_points",))
def weightnet_forward(x_nchw, params, tile_points=1024):
    """Apply WeightNet to x_nchw [B, Cin, H, W]; returns [B, Cout, H, W]."""
    (w1, b1), (w2, b2), (w3, b3) = params
    B, Cin, H, W = x_nchw.shape
    Cout = w3.shape[1]
    HW = H * W

    # Free reshape: NCHW -> [B, Cin, HW]; points land on the lane axis.
    x = x_nchw.reshape(B, Cin, HW)

    # Pad the point (lane) axis only if HW is not 128-aligned; this is the only
    # case where any extra HBM traffic is incurred, and only on the lane tail.
    HW_pad = pl.cdiv(HW, 128) * 128
    if HW_pad != HW:
        x = jnp.pad(x, ((0, 0), (0, 0), (0, HW_pad - HW)))

    # Tile size on the point axis: largest multiple of 128 that divides HW_pad,
    # capped at tile_points (static Python ints — shapes are static under jit).
    T = max(128, (min(tile_points, HW_pad) // 128) * 128)
    while HW_pad % T:
        T -= 128

    # Weights transposed for left-multiplication; biases as column vectors so
    # they broadcast over the lane/point axis.  All tiny, stay VMEM-resident.
    wt1, bt1 = w1.T, b1.T
    wt2, bt2 = w2.T, b2.T
    wt3, bt3 = w3.T, b3.T

    grid = (B, HW_pad // T)
    full = lambda arr: pl.BlockSpec(arr.shape, lambda b, i: (0,) * arr.ndim)

    out = pl.pallas_call(
        _weightnet_kernel,
        out_shape=jax.ShapeDtypeStruct((B, Cout, HW_pad), x_nchw.dtype),
        grid_spec=pltpu.PrefetchScalarGridSpec(
            num_scalar_prefetch=0,
            grid=grid,
            in_specs=[
                pl.BlockSpec((None, Cin, T), lambda b, i: (b, 0, i)),
                full(wt1), full(bt1), full(wt2), full(bt2), full(wt3), full(bt3),
            ],
            out_specs=pl.BlockSpec((None, Cout, T), lambda b, i: (b, 0, i)),
        ),
        compiler_params=pltpu.CompilerParams(
            dimension_semantics=("parallel", "parallel")),
    )(x, wt1, bt1, wt2, bt2, wt3, bt3)

    if HW_pad != HW:
        out = out[:, :, :HW]
    # [B, Cout, HW] -> NCHW is a pure reshape: zero data movement.
    return out.reshape(B, Cout, H, W)


def init_weightnet_params(key, in_channel, out_channel, hidden_unit=(8, 8)):
    """Deterministic synthetic params. Weights stored as (Cin, Cout) for x @ W."""
    dims = [in_channel, *hidden_unit, out_channel]
    params = []
    for li in range(len(dims) - 1):
        key, kw, kb = jax.random.split(key, 3)
        cin, cout = dims[li], dims[li + 1]
        scale = 1.0 / jnp.sqrt(jnp.float32(cin))
        w = jax.random.uniform(kw, (cin, cout), jnp.float32, -scale, scale)
        b = jax.random.uniform(kb, (1, cout), jnp.float32, -scale, scale)
        params.append((w, b))
    return params


def weightnet_reference(x_nchw, params):
    """Pure-JAX reference mirroring the PyTorch forward (1x1 convs + ReLU)."""
    w = x_nchw
    for wmat, bias in params:
        w = jnp.einsum("bchw,co->bohw", w, wmat) + bias[0][None, :, None, None]
        w = jnp.maximum(w, 0.0)
    return w


# TODO(synk): bn=True branch (BatchNorm2d) is not implemented; module default bn=False.

if __name__ == "__main__":
    key = jax.random.PRNGKey(0)
    k_x, k_p, k_x2 = jax.random.split(key, 3)

    # localized_xyz: [B, in_channel=3, nsample, npoint]
    B, Cin, H, W = 2, 3, 16, 128
    out_channel = 16
    x = jax.random.normal(k_x, (B, Cin, H, W), jnp.float32)
    params = init_weightnet_params(k_p, Cin, out_channel, hidden_unit=(8, 8))

    out = jax.block_until_ready(weightnet_forward(x, params))
    ref = weightnet_reference(x, params)
    assert out.shape == (B, out_channel, H, W), out.shape
    assert jnp.allclose(out, ref, atol=1e-5, rtol=1e-5), float(
        jnp.max(jnp.abs(out - ref)))

    # Ragged spatial extent (exercises the lane-padding tail path).
    x2 = jax.random.normal(k_x2, (B, Cin, 5, 7), jnp.float32)
    out2 = jax.block_until_ready(weightnet_forward(x2, params))
    ref2 = weightnet_reference(x2, params)
    assert out2.shape == (B, out_channel, 5, 7), out2.shape
    assert jnp.allclose(out2, ref2, atol=1e-5, rtol=1e-5), float(
        jnp.max(jnp.abs(out2 - ref2)))

    print("KERNEL_OK")
</pallas_src>

<mosaic_0001>
module attributes {stable_mosaic.version = 11 : i64} {
  func.func @_weightnet_kernel(%arg0: i32, %arg1: i32, %arg2: memref<1x3x1024xf32, #tpu.memory_space<vmem>>, %arg3: memref<8x3xf32, #tpu.memory_space<vmem>>, %arg4: memref<8x1xf32, #tpu.memory_space<vmem>>, %arg5: memref<8x8xf32, #tpu.memory_space<vmem>>, %arg6: memref<8x1xf32, #tpu.memory_space<vmem>>, %arg7: memref<16x8xf32, #tpu.memory_space<vmem>>, %arg8: memref<16x1xf32, #tpu.memory_space<vmem>>, %arg9: memref<1x16x1024xf32, #tpu.memory_space<vmem>>) attributes {dimension_semantics = [#tpu.dimension_semantics<parallel>, #tpu.dimension_semantics<parallel>], iteration_bounds = array<i64: 2, 2>, scalar_prefetch = 0 : i64, scratch_operands = 0 : i64, tpu.core_type = #tpu.core_type<tc>, window_params = [{transform_indices = @transform_0, window_bounds = array<i64: 1, 3, 1024>}, {pipeline_mode = #tpu.pipeline_mode<synchronous>, transform_indices = @transform_1, window_bounds = array<i64: 8, 3>}, {pipeline_mode = #tpu.pipeline_mode<synchronous>, transform_indices = @transform_2, window_bounds = array<i64: 8, 1>}, {pipeline_mode = #tpu.pipeline_mode<synchronous>, transform_indices = @transform_3, window_bounds = array<i64: 8, 8>}, {pipeline_mode = #tpu.pipeline_mode<synchronous>, transform_indices = @transform_4, window_bounds = array<i64: 8, 1>}, {pipeline_mode = #tpu.pipeline_mode<synchronous>, transform_indices = @transform_5, window_bounds = array<i64: 16, 8>}, {pipeline_mode = #tpu.pipeline_mode<synchronous>, transform_indices = @transform_6, window_bounds = array<i64: 16, 1>}, {transform_indices = @transform_7, window_bounds = array<i64: 1, 16, 1024>}]} {
    %c0 = arith.constant 0 : index
    %c0_0 = arith.constant 0 : index
    %c0_1 = arith.constant 0 : index
    %0 = vector.load %arg2[%c0, %c0_0, %c0_1] : memref<1x3x1024xf32, #tpu.memory_space<vmem>>, vector<1x3x1024xf32>
    %1 = vector.shape_cast %0 : vector<1x3x1024xf32> to vector<3x1024xf32>
    %c0_2 = arith.constant 0 : index
    %c0_3 = arith.constant 0 : index
    %2 = vector.load %arg3[%c0_2, %c0_3] : memref<8x3xf32, #tpu.memory_space<vmem>>, vector<8x3xf32>
    %3 = vector.extract_strided_slice %2 {offsets = [0, 0], sizes = [8, 1], strides = [1, 1]} : vector<8x3xf32> to vector<8x1xf32>
    %4 = vector.extract_strided_slice %1 {offsets = [0, 0], sizes = [1, 1024], strides = [1, 1]} : vector<3x1024xf32> to vector<1x1024xf32>
    %5 = vector.broadcast %3 : vector<8x1xf32> to vector<8x1024xf32>
    %6 = vector.broadcast %4 : vector<1x1024xf32> to vector<8x1024xf32>
    %7 = arith.mulf %5, %6 : vector<8x1024xf32>
    %8 = vector.extract_strided_slice %2 {offsets = [0, 1], sizes = [8, 1], strides = [1, 1]} : vector<8x3xf32> to vector<8x1xf32>
    %9 = vector.extract_strided_slice %1 {offsets = [1, 0], sizes = [1, 1024], strides = [1, 1]} : vector<3x1024xf32> to vector<1x1024xf32>
    %10 = vector.broadcast %8 : vector<8x1xf32> to vector<8x1024xf32>
    %11 = vector.broadcast %9 : vector<1x1024xf32> to vector<8x1024xf32>
    %12 = arith.mulf %10, %11 : vector<8x1024xf32>
    %13 = arith.addf %7, %12 : vector<8x1024xf32>
    %14 = vector.extract_strided_slice %2 {offsets = [0, 2], sizes = [8, 1], strides = [1, 1]} : vector<8x3xf32> to vector<8x1xf32>
    %15 = vector.extract_strided_slice %1 {offsets = [2, 0], sizes = [1, 1024], strides = [1, 1]} : vector<3x1024xf32> to vector<1x1024xf32>
    %16 = vector.broadcast %14 : vector<8x1xf32> to vector<8x1024xf32>
    %17 = vector.broadcast %15 : vector<1x1024xf32> to vector<8x1024xf32>
    %18 = arith.mulf %16, %17 : vector<8x1024xf32>
    %19 = arith.addf %13, %18 : vector<8x1024xf32>
    %c0_4 = arith.constant 0 : index
    %c0_5 = arith.constant 0 : index
    %20 = vector.load %arg4[%c0_4, %c0_5] : memref<8x1xf32, #tpu.memory_space<vmem>>, vector<8x1xf32>
    %21 = vector.broadcast %20 : vector<8x1xf32> to vector<8x1024xf32>
    %22 = arith.addf %19, %21 : vector<8x1024xf32>
    %cst = arith.constant 0.000000e+00 : f32
    %23 = vector.broadcast %cst : f32 to vector<8x1024xf32>
    %24 = arith.maximumf %22, %23 : vector<8x1024xf32>
    %c0_6 = arith.constant 0 : index
    %c0_7 = arith.constant 0 : index
    %25 = vector.load %arg5[%c0_6, %c0_7] : memref<8x8xf32, #tpu.memory_space<vmem>>, vector<8x8xf32>
    %cst_8 = arith.constant dense<0.000000e+00> : vector<8x1024xf32>
    %26 = tpu.matmul %25, %24, %cst_8 {dimension_numbers = #tpu.dot_dimension_numbers<[1], [0], [0], [1], [0, 0, 1, 1], [], []>} : vector<8x8xf32>, vector<8x1024xf32>, vector<8x1024xf32> -> vector<8x1024xf32>
    %c0_9 = arith.constant 0 : index
    %c0_10 = arith.constant 0 : index
    %27 = vector.load %arg6[%c0_9, %c0_10] : memref<8x1xf32, #tpu.memory_space<vmem>>, vector<8x1xf32>
    %28 = vector.broadcast %27 : vector<8x1xf32> to vector<8x1024xf32>
    %29 = arith.addf %26, %28 : vector<8x1024xf32>
    %cst_11 = arith.constant 0.000000e+00 : f32
    %30 = vector.broadcast %cst_11 : f32 to vector<8x1024xf32>
    %31 = arith.maximumf %29, %30 : vector<8x1024xf32>
    %c0_12 = arith.constant 0 : index
    %c0_13 = arith.constant 0 : index
    %32 = vector.load %arg7[%c0_12, %c0_13] : memref<16x8xf32, #tpu.memory_space<vmem>>, vector<16x8xf32>
    %cst_14 = arith.constant dense<0.000000e+00> : vector<16x1024xf32>
    %33 = tpu.matmul %32, %31, %cst_14 {dimension_numbers = #tpu.dot_dimension_numbers<[1], [0], [0], [1], [0, 0, 1, 1], [], []>} : vector<16x8xf32>, vector<8x1024xf32>, vector<16x1024xf32> -> vector<16x1024xf32>
    %c0_15 = arith.constant 0 : index
    %c0_16 = arith.constant 0 : index
    %34 = vector.load %arg8[%c0_15, %c0_16] : memref<16x1xf32, #tpu.memory_space<vmem>>, vector<16x1xf32>
    %35 = vector.broadcast %34 : vector<16x1xf32> to vector<16x1024xf32>
    %36 = arith.addf %33, %35 : vector<16x1024xf32>
    %cst_17 = arith.constant 0.000000e+00 : f32
    %37 = vector.broadcast %cst_17 : f32 to vector<16x1024xf32>
    %38 = arith.maximumf %36, %37 : vector<16x1024xf32>
    %c0_18 = arith.constant 0 : index
    %c0_19 = arith.constant 0 : index
    %c0_20 = arith.constant 0 : index
    %39 = vector.load %arg9[%c0_18, %c0_19, %c0_20] : memref<1x16x1024xf32, #tpu.memory_space<vmem>>, vector<1x16x1024xf32>
    %40 = vector.shape_cast %39 : vector<1x16x1024xf32> to vector<16x1024xf32>
    %41 = vector.shape_cast %38 : vector<16x1024xf32> to vector<1x16x1024xf32>
    tpu.vector_store %arg9[%c0_18, %c0_19, %c0_20], %41 {strides = array<i32>} : memref<1x16x1024xf32, #tpu.memory_space<vmem>>, vector<1x16x1024xf32>,
    return
  }
  func.func @transform_0(%arg0: i32, %arg1: i32) -> (i32, i32, i32) {
    %c0_i32 = arith.constant 0 : i32
    %c0_i32_0 = arith.constant 0 : i32
    return %arg0, %c0_i32, %arg1 : i32, i32, i32
  }
  func.func @transform_1(%arg0: i32, %arg1: i32) -> (i32, i32) {
    %c0_i32 = arith.constant 0 : i32
    %c0_i32_0 = arith.constant 0 : i32
    %c0_i32_1 = arith.constant 0 : i32
    return %c0_i32, %c0_i32_0 : i32, i32
  }
  func.func @transform_2(%arg0: i32, %arg1: i32) -> (i32, i32) {
    %c0_i32 = arith.constant 0 : i32
    %c0_i32_0 = arith.constant 0 : i32
    %c0_i32_1 = arith.constant 0 : i32
    return %c0_i32, %c0_i32_0 : i32, i32
  }
  func.func @transform_3(%arg0: i32, %arg1: i32) -> (i32, i32) {
    %c0_i32 = arith.constant 0 : i32
    %c0_i32_0 = arith.constant 0 : i32
    %c0_i32_1 = arith.constant 0 : i32
    return %c0_i32, %c0_i32_0 : i32, i32
  }
  func.func @transform_4(%arg0: i32, %arg1: i32) -> (i32, i32) {
    %c0_i32 = arith.constant 0 : i32
    %c0_i32_0 = arith.constant 0 : i32
    %c0_i32_1 = arith.constant 0 : i32
    return %c0_i32, %c0_i32_0 : i32, i32
  }
  func.func @transform_5(%arg0: i32, %arg1: i32) -> (i32, i32) {
    %c0_i32 = arith.constant 0 : i32
    %c0_i32_0 = arith.constant 0 : i32
    %c0_i32_1 = arith.constant 0 : i32
    return %c0_i32, %c0_i32_0 : i32, i32
  }
  func.func @transform_6(%arg0: i32, %arg1: i32) -> (i32, i32) {
    %c0_i32 = arith.constant 0 : i32
    %c0_i32_0 = arith.constant 0 : i32
    %c0_i32_1 = arith.constant 0 : i32
    return %c0_i32, %c0_i32_0 : i32, i32
  }
  func.func @transform_7(%arg0: i32, %arg1: i32) -> (i32, i32, i32) {
    %c0_i32 = arith.constant 0 : i32
    %c0_i32_0 = arith.constant 0 : i32
    return %arg0, %c0_i32, %arg1 : i32, i32, i32
  }
}

</mosaic_0001>

<bundles_post_ra>
// kernel: weightnet_forward.1
= control target key start
LH: loop header
LB: loop body
LE: loop exit
PB: predicated region body
PF: predicated region fallthrough
CT: control target
= control target key end

     0   :  { %s1589_s24 = smov 0   ;;  %s1591_s25 = smov 0   ;;  %s1769_s0 = inlined_call_operand.vmem [shape: f32[2,3,2048], index: 0, kind: input, shape index: {}]   ;;  %s1770_s1 = inlined_call_operand.vmem [shape: f32[8,3], index: 1, kind: input, shape index: {}]   ;;  %s1771_s2 = inlined_call_operand.vmem [shape: f32[8,1], index: 2, kind: input, shape index: {}]   ;;  %s1772_s3 = inlined_call_operand.vmem [shape: f32[8,8], index: 3, kind: input, shape index: {}]   ;;  %s1773_s4 = inlined_call_operand.vmem [shape: f32[8,1], index: 4, kind: input, shape index: {}]   ;;  %s1774_s5 = inlined_call_operand.vmem [shape: f32[16,8], index: 5, kind: input, shape index: {}]   ;;  %s1775_s6 = inlined_call_operand.vmem [shape: f32[16,1], index: 6, kind: input, shape index: {}]   ;;  %s1776_s7 = inlined_call_operand.vmem [shape: f32[2,16,2048], index: 7, kind: output, shape index: {}]  }
   0x1   :  { %s1593_s26 = smov 0   ;;  %s1595_s27 = smov 0  }
   0x2   :  { %s1597_s28 = smov 0   ;;  %s1599_s29 = smov 0  }
   0x3   :  { %s1601_s30 = smov 0  }
   0x4 LB: > { %s26_s8 = sadd.s32 1, %s1535_s28  ;;  %s29_s9 = sadd.s32 1, %s1539_s29  ;;  %s1543_s30 = sphi %s1601_s30, %s17_s30   ;;  %s1539_s29 = sphi %s1599_s29, %s1783_s29   ;;  %s1535_s28 = sphi %s1597_s28, %s1782_s28   ;;  %s1531_s27 = sphi %s1595_s27, %s1781_s27   ;;  %s1527_s26 = sphi %s1593_s26, %s1780_s26   ;;  %s1523_s25 = sphi %s1591_s25, %s1779_s25   ;;  %s1519_s24 = sphi %s1589_s24, %s1778_s24  }
   0x5   : > { %p27_p0 = scmp.ge.s32.totalorder %s26_s8, 2  ;;  %s1397_s10 = sadd.s32 4294967295, %s1543_s30  }
   0x6   : > { %p202_p1 = scmp.ne.s32.totalorder %s1523_s25, %s1519_s24  ;;  %p203_p2 = scmp.eq.s32.totalorder %s1397_s10, 3 }
   0x7   : > { %s1785_s8 = smov (%p27_p0, %s26_s8), 0  ;;  %s1787_s9 = smov (!%p27_p0, %s29_s9), %s1539_s29 }
   0x8   : > { %s188_s11 = ssub.s32 %s1535_s28, %s1785_s8  ;;  %p31_p3 = scmp.ge.s32.totalorder %s1787_s9, 2 }
   0x9   : > { %p1401_p4 = scmp.ge.s32.totalorder %s1543_s30, 1  ;;  %p1635_p5 = por %p203_p2, %p202_p1 }
   0xa   : > { %p258_p6 = scmp.lt.s32.totalorder %s1543_s30, 5  ;;  %s1789_s9 = smov (%p31_p3, %s1787_s9), 0 }
   0xb   : > { %s187_s13 = ssub.s32 %s1539_s29, %s1789_s9  ;;  %s192_s15 = sadd.s32 1, %s1523_s25 }
   0xc   : > { %p259_p7 = pnand %p1401_p4, %p258_p6  ;;  %s189_s14 = sor.u32 %s188_s11, %s187_s13 }
   0xd   : > { %p190_p8 = scmp.eq.s32.totalorder %s189_s14, 0  ;;  %v308_v0 = vld [vmem:[%s1770_s1] sm:$0xff] (!%p259_p7)  ;;  %v1545_v1 = vmov (!%p259_p7), 2   ;;  %v1546_v2 = vmov (!%p259_p7), 0   ;;  %v1547_v4 = vmov (!%p259_p7), 1   ;;  %v910_v6 = vld [vmem:[%s1775_s6 + $0x8] sm:$0xff] (!%p259_p7)  ;;  %v318_v8 = vlaneseq (!%p259_p7) }
   0xe   : > { %262 = sbr.rel (%p259_p7) target bundleno = 618 (0x26a), region = 48  ;;  %1486 = vset.pattern.permute.xlu1 (!%p259_p7), %v1545_v1  ;;  %1484 = vset.pattern.permute.xlu0 (!%p259_p7), %v1546_v2  ;;  %v582_v3 = vld [vmem:[%s1771_s2] sm:$0xff] (!%p259_p7)  ;;  %v1548_v7 = vmov (!%p259_p7), 0.0   ;;  %s1663_s11 = sshll.u32 (!%p259_p7), %s1527_s26, 3  ;;  %vm611_vm0 = vcmask (!%p259_p7), 64512  }
   0xf   : > { %s1646_s16 = scalar_select %p190_p8, %s1523_s25, %s192_s15  }
  0x10   : > { %491 = vperm.xlu1 (!%p259_p7), %1486, %v308_v0   ;;  %311 = vperm.xlu0 (!%p259_p7), %1484, %v308_v0   ;;  %v605_v5 = vld [vmem:[%s1773_s4] sm:$0xff] (!%p259_p7)  ;;  %p294_p9 = scmp.lt.s32.totalorder (!%p259_p7), %s1531_s27, 1  ;;  %p296_p10 = scmp.lt.s32.totalorder (!%p259_p7), %s1663_s11, 15  ;;  %v319_v9 = vshrl.u32 (!%p259_p7), %v318_v8, 7 }
  0x11   : > { %679 = vmatprep.mubr.f32.mxu0 (!%p259_p7), %v1548_v7  ;;  %750 = vmatprep.mubr.f32.mxu1 (!%p259_p7), %v1548_v7 }
  0x12   : > { %v324_v10 = vsub.s32 (!%p259_p7), 4, %v319_v9  ;;  %v408_v11 = vsub.s32 (!%p259_p7), 5, %v319_v9  ;;  %v500_v12 = vsub.s32 (!%p259_p7), 6, %v319_v9  ;;  %v320_v14 = vsub.s32 (!%p259_p7), 0, %v319_v9 }
  0x13   : > { %v404_v15 = vsub.s32 (!%p259_p7), 1, %v319_v9  ;;  %v496_v25 = vsub.s32 (!%p259_p7), 2, %v319_v9 }
  0x14   : > { %1487 = vset.pattern.permute.xlu1 (!%p259_p7), %v1546_v2  ;;  %1485 = vset.pattern.permute.xlu0 (!%p259_p7), %v1547_v4 }
  0x15   : > { %585 = vperm.xlu1 %1487, %v582_v3   ;;  %399 = vperm.xlu0 %1485, %v308_v0   ;;  %s295_s13 = scalar_select %p294_p9, %s1531_s27, 1 }
  0x16   : > { %s297_s14 = scalar_select %p296_p10, %s1663_s11, 15 }
  0x17   : > { %s1404_s15 = sshll.u32 %s295_s13, 4 }
  0x18   : > { %s299_s17 = sadd.s32 %s1404_s15, %s297_s14 }
  0x19   : > { %608 = vperm.xlu1 %1487, %v605_v5   ;;  %1488 = vset.pattern.permute.xlu0 %v1546_v2  ;;  %s1405_s18 = sshll.u32 %s299_s17, 2 }
  0x1a   : > { %s301_s21 = scalar_lea.vmem %s1769_s0, %s1405_s18  ;;  %s290_s18 = sand.u32 1, %s1519_s24  }
  0x1b   : > { %v304_v13 = vld [vmem:[%s301_s21] sm:$0x77]  ;;  %v305_v16 = vld [vmem:[%s301_s21 + $0x8] sm:$0x77]  ;;  %v306_v30 = vld [vmem:[%s301_s21 + $0x10] sm:$0x77] }
  0x1c   : > { %v325_v17 = vrot.slane %v304_v13, %v324_v10  ;;  %v409_v18 = vrot.slane %v304_v13, %v408_v11  ;;  %v501_v19 = vrot.slane %v304_v13, %v500_v12  ;;  %v333_v20 = vrot.slane %v305_v16, %v324_v10  ;;  %v307_v31 = vld [vmem:[%s301_s21 + $0x18] sm:$0x77]  ;;  %s1402_s19 = sshll.u32 %s290_s18, 7  ;;  %s1420_s24 = sshll.u32 (%p1635_p5), %s1531_s27, 5 }
  0x1d   : > { %918 = vperm.xlu1 %1487, %v910_v6   ;;  %v417_v21 = vrot.slane %v305_v16, %v408_v11  ;;  %v509_v22 = vrot.slane %v305_v16, %v500_v12  ;;  %v321_v23 = vrot.slane %v304_v13, %v320_v14  ;;  %v405_v24 = vrot.slane %v304_v13, %v404_v15  ;;  %s1707_s20 = scalar_lea.vmem [#allocation2], %s1402_s19  ;;  %s1276_s12 = sadd.s32 (%p1635_p5), %s1420_s24, %s1663_s11 }
  0x1e   : > { %v365_v26 = vrot.slane %v325_v17, %v320_v14  ;;  %v449_v27 = vrot.slane %v409_v18, %v404_v15  ;;  %v541_v28 = vrot.slane %v501_v19, %v496_v25  ;;  %v373_v29 = vrot.slane %v333_v20, %v320_v14  ;;  %s1421_s21 = sshll.u32 (%p1635_p5), %s1276_s12, 3 }
  0x1f   : > { %v457_v32 = vrot.slane %v417_v21, %v404_v15  ;;  %v549_v33 = vrot.slane %v509_v22, %v496_v25  ;;  %v361_v34 = vrot.slane %v321_v23, %v320_v14  ;;  %v445_v35 = vrot.slane %v405_v24, %v404_v15  ;;  %s1278_s23 = scalar_lea.vmem (%p1635_p5), %s1776_s7, %s1421_s21 }
  0x20   : > { %v497_v36 = vrot.slane %v304_v13, %v496_v25  ;;  %v329_v37 = vrot.slane %v305_v16, %v320_v14  ;;  %v413_v38 = vrot.slane %v305_v16, %v404_v15  ;;  %v505_v39 = vrot.slane %v305_v16, %v496_v25 }
  0x21   : > { %v341_v40 = vrot.slane %v306_v30, %v324_v10  ;;  %v425_v41 = vrot.slane %v306_v30, %v408_v11  ;;  %v517_v42 = vrot.slane %v306_v30, %v500_v12  ;;  %v349_v43 = vrot.slane %v307_v31, %v324_v10 }
  0x22   : > { %v433_v44 = vrot.slane %v307_v31, %v408_v11  ;;  %v525_v45 = vrot.slane %v307_v31, %v500_v12  ;;  %v337_v46 = vrot.slane %v306_v30, %v320_v14  ;;  %v421_v47 = vrot.slane %v306_v30, %v404_v15 }
  0x23   : > { %v513_v48 = vrot.slane %v306_v30, %v496_v25  ;;  %v345_v49 = vrot.slane %v307_v31, %v320_v14  ;;  %v429_v50 = vrot.slane %v307_v31, %v404_v15  ;;  %v521_v51 = vrot.slane %v307_v31, %v496_v25 }
  0x24   : > { %v537_v52 = vrot.slane %v497_v36, %v496_v25  ;;  %v369_v53 = vrot.slane %v329_v37, %v320_v14  ;;  %v453_v54 = vrot.slane %v413_v38, %v404_v15  ;;  %v545_v55 = vrot.slane %v505_v39, %v496_v25 }
  0x25   : > { %v381_v56 = vrot.slane %v341_v40, %v320_v14  ;;  %v465_v57 = vrot.slane %v425_v41, %v404_v15  ;;  %v557_v58 = vrot.slane %v517_v42, %v496_v25  ;;  %v389_v59 = vrot.slane %v349_v43, %v320_v14 }
  0x26   : > { %v473_v61 = vrot.slane %v433_v44, %v404_v15  ;;  %v565_v62 = vrot.slane %v525_v45, %v496_v25  ;;  %v377_v63 = vrot.slane %v337_v46, %v320_v14  ;;  %v461_v0 = vrot.slane %v421_v47, %v404_v15 }
  0x27   : > { %v553_v2 = vrot.slane %v513_v48, %v496_v25  ;;  %v385_v3 = vrot.slane %v345_v49, %v320_v14  ;;  %v469_v4 = vrot.slane %v429_v50, %v404_v15  ;;  %v561_v5 = vrot.slane %v521_v51, %v496_v25 }
  0x8f   : > { %v312_v60 = vpop.permute.xlu0 %311  ;;  %v492_v1 = vpop.permute.xlu1 %491 }
  0x90   : > { %v391_v6 = vmul.f32 %v365_v26, %v312_v60  ;;  %v567_v8 = vmul.f32 %v541_v28, %v492_v1  ;;  %v393_v9 = vmul.f32 %v373_v29, %v312_v60  ;;  %v569_v10 = vmul.f32 %v549_v33, %v492_v1 }
  0x91   : > { %v390_v11 = vmul.f32 %v361_v34, %v312_v60  ;;  %v566_v12 = vmul.f32 %v537_v52, %v492_v1  ;;  %v392_v13 = vmul.f32 %v369_v53, %v312_v60  ;;  %v568_v16 = vmul.f32 %v545_v55, %v492_v1 }
  0x92   : > { %v395_v17 = vmul.f32 %v381_v56, %v312_v60  ;;  %v571_v18 = vmul.f32 %v557_v58, %v492_v1  ;;  %v397_v19 = vmul.f32 %v389_v59, %v312_v60  ;;  %v573_v20 = vmul.f32 %v565_v62, %v492_v1 }
  0x93   : > { %v394_v22 = vmul.f32 %v377_v63, %v312_v60  ;;  %v570_v23 = vmul.f32 %v553_v2, %v492_v1  ;;  %v396_v24 = vmul.f32 %v385_v3, %v312_v60  ;;  %v572_v30 = vmul.f32 %v561_v5, %v492_v1  ;;  %v909_v2 = vld [vmem:[%s1775_s6] sm:$0xff] }
  0x94   : > { %v400_v21 = vpop.permute.xlu0 %399  ;;  %913 = vperm.xlu0 %1488, %v909_v2  }
  0x95   : > { %v475_v14 = vmul.f32 %v449_v27, %v400_v21  ;;  %v477_v15 = vmul.f32 %v457_v32, %v400_v21  ;;  %v474_v25 = vmul.f32 %v445_v35, %v400_v21  ;;  %v476_v26 = vmul.f32 %v453_v54, %v400_v21  ;;  %v586_v27 = vpop.permute.xlu1 %585 }
  0x96   : > { %v479_v28 = vmul.f32 %v465_v57, %v400_v21  ;;  %v481_v29 = vmul.f32 %v473_v61, %v400_v21  ;;  %v478_v31 = vmul.f32 %v461_v0, %v400_v21  ;;  %v480_v33 = vmul.f32 %v469_v4, %v400_v21  ;;  %v604_v61 = vld [vmem:[%s1772_s3] sm:$0xff] }
  0x97   : > { %v483_v34 = vadd.f32 %v475_v14, %v391_v6  ;;  %v485_v36 = vadd.f32 %v477_v15, %v393_v9  ;;  %v482_v37 = vadd.f32 %v474_v25, %v390_v11  ;;  %v484_v38 = vadd.f32 %v476_v26, %v392_v13 }
  0x98   : > { %v487_v39 = vadd.f32 %v479_v28, %v395_v17  ;;  %v489_v40 = vadd.f32 %v481_v29, %v397_v19  ;;  %v486_v41 = vadd.f32 %v478_v31, %v394_v22  ;;  %v488_v42 = vadd.f32 %v480_v33, %v396_v24  ;;  %v908_v31 = vld [vmem:[%s1774_s5 + $0x8] sm:$0xff] }
  0x99   : > { %v575_v43 = vadd.f32 %v567_v8, %v483_v34  ;;  %v577_v44 = vadd.f32 %v569_v10, %v485_v36  ;;  %v574_v45 = vadd.f32 %v566_v12, %v482_v37  ;;  %v576_v46 = vadd.f32 %v568_v16, %v484_v38  ;;  %v609_v3 = vpop.permute.xlu1 %608 }
  0x9a   : > { %v579_v32 = vadd.f32 %v571_v18, %v487_v39  ;;  %v581_v35 = vadd.f32 %v573_v20, %v489_v40  ;;  %v578_v47 = vadd.f32 %v570_v23, %v486_v41  ;;  %v580_v48 = vadd.f32 %v572_v30, %v488_v42  ;;  %v907_v30 = vld [vmem:[%s1774_s5] sm:$0xff] }
  0x9b   : > { %v589_v49 = vadd.f32 %v586_v27, %v575_v43  ;;  %v591_v50 = vadd.f32 %v586_v27, %v577_v44  ;;  %v588_v51 = vadd.f32 %v586_v27, %v574_v45  ;;  %v590_v52 = vadd.f32 %v586_v27, %v576_v46 }
  0x9c   : > { %v593_v53 = vadd.f32 %v586_v27, %v579_v32  ;;  %v595_v54 = vadd.f32 %v586_v27, %v581_v35  ;;  %v592_v55 = vadd.f32 %v586_v27, %v578_v47  ;;  %v594_v56 = vadd.f32 %v586_v27, %v580_v48 }
  0x9d   : > { %v597_v57 = vmax.f32 %v589_v49, 0.0  ;;  %v599_v58 = vmax.f32 %v591_v50, 0.0  ;;  %v596_v59 = vmax.f32 %v588_v51, 0.0  ;;  %v598_v60 = vmax.f32 %v590_v52, 0.0  ;;  %v919_v43 = vpop.permute.xlu1 %918 }
  0x9e   : > { %v601_v62 = vmax.f32 %v593_v53, 0.0  ;;  %v603_v63 = vmax.f32 %v595_v54, 0.0  ;;  %v600_v0 = vmax.f32 %v592_v55, 0.0  ;;  %v602_v1 = vmax.f32 %v594_v56, 0.0 }
  0x9f   : > { %615 = vmatprep.subr.mxu0 %v597_v57  ;;  %686 = vmatprep.subr.mxu1 %v599_v58 }
  0xa0   : > { %616 = vmatpush1.msra.mxu0 %v596_v59  ;;  %687 = vmatpush1.msra.mxu1 %v598_v60 }
  0xa1   : > { %1406 = vmatmul.mubr.msk.f32.vlgmr.msra.gmra.mrb[0].mxu0 %vm611_vm0, %v604_v61  ;;  %1407 = vmatmul.mubr.msk.f32.vlgmr.msra.gmra.mrb[0].mxu1 %vm611_vm0, %v604_v61 }
  0xa2   : > { %757 = vmatprep.subr.mxu0 %v601_v62  ;;  %828 = vmatprep.subr.mxu1 %v603_v63 }
  0xa3   : > { %758 = vmatpush1.msra.mxu0 %v600_v0  ;;  %829 = vmatpush1.msra.mxu1 %v602_v1 }
  0xa4   : > { %821 = vmatprep.mubr.f32.mxu0 %v1548_v7  ;;  %892 = vmatprep.mubr.f32.mxu1 %v1548_v7 }
  0xa5   : > { %1408 = vmatmul.mubr.msk.f32.vlgmr.msra.gmra.mrb[2].mxu0 %vm611_vm0, %v604_v61  ;;  %1409 = vmatmul.mubr.msk.f32.vlgmr.msra.gmra.mrb[2].mxu1 %vm611_vm0, %v604_v61 }
  0xa6   : > { %991 = vmatprep.mubr.f32.mxu0 %v1548_v7  ;;  %1068 = vmatprep.mubr.f32.mxu1 %v1548_v7 }
 0x113   : > { %v914_v33 = vpop.permute.xlu0 %913 }
 0x174   : > { %v681_v4 = vpop.f32.mrb[0].mxu0  ;;  %v752_v5 = vpop.f32.mrb[0].mxu1 }
 0x175   : > { %v682_v6 = vadd.f32 %v681_v4, %v609_v3  ;;  %v753_v8 = vadd.f32 %v752_v5, %v609_v3  ;;  %v683_v9 = vpop.f32.mrb[1].mxu0  ;;  %v754_v10 = vpop.f32.mrb[1].mxu1 }
 0x176   : > { %v684_v11 = vadd.f32 %v683_v9, %v609_v3  ;;  %v755_v12 = vadd.f32 %v754_v10, %v609_v3 }
 0x177   : > { %v899_v19 = vmax.f32 %v682_v6, 0.0  ;;  %v901_v20 = vmax.f32 %v753_v8, 0.0 }
 0x178   : > { %v900_v13 = vmax.f32 %v684_v11, 0.0  ;;  %v902_v16 = vmax.f32 %v755_v12, 0.0  ;;  %v823_v17 = vpop.f32.mrb[2].mxu0  ;;  %v894_v18 = vpop.f32.mrb[2].mxu1 }
 0x179   : > { %v824_v21 = vadd.f32 %v823_v17, %v609_v3  ;;  %v895_v22 = vadd.f32 %v894_v18, %v609_v3  ;;  %v825_v23 = vpop.f32.mrb[3].mxu0  ;;  %v896_v24 = vpop.f32.mrb[3].mxu1 }
 0x17a   : > { %v826_v14 = vadd.f32 %v825_v23, %v609_v3  ;;  %v897_v15 = vadd.f32 %v896_v24, %v609_v3  ;;  %927 = vmatprep.subr.mxu0 %v900_v13  ;;  %1004 = vmatprep.subr.mxu1 %v902_v16 }
 0x17b   : > { %928 = vmatpush1.msra.mxu0 %v899_v19  ;;  %1005 = vmatpush1.msra.mxu1 %v901_v20  ;;  %v903_v28 = vmax.f32 %v824_v21, 0.0  ;;  %v905_v29 = vmax.f32 %v895_v22, 0.0 }
 0x17c   : > { %v904_v25 = vmax.f32 %v826_v14, 0.0  ;;  %v906_v26 = vmax.f32 %v897_v15, 0.0  ;;  %1410 = vmatmul.mubr.msk.f32.vlgmr.msra.gmra.mrb[4].mxu0 %vm611_vm0, %v907_v30  ;;  %1412 = vmatmul.mubr.msk.f32.vlgmr.msra.gmra.mrb[4].mxu1 %vm611_vm0, %v907_v30 }
 0x17d   : > { %997 = vmatprep.mubr.f32.mxu0 %v1548_v7  ;;  %1074 = vmatprep.mubr.f32.mxu1 %v1548_v7 }
 0x17e   : > { %1081 = vmatprep.subr.mxu0 %v904_v25  ;;  %1158 = vmatprep.subr.mxu1 %v906_v26 }
 0x17f   : > { %1082 = vmatpush1.msra.mxu0 %v903_v28  ;;  %1159 = vmatpush1.msra.mxu1 %v905_v29 }
 0x180   : > { %1411 = vmatmul.mubr.msk.f32.gmra.mrb[6].mxu0 %vm611_vm0, %v908_v31  ;;  %1413 = vmatmul.mubr.msk.f32.gmra.mrb[6].mxu1 %vm611_vm0, %v908_v31 }
 0x181   : > { %1145 = vmatprep.mubr.f32.mxu0 %v1548_v7  ;;  %1222 = vmatprep.mubr.f32.mxu1 %v1548_v7 }
 0x184   : > { %1414 = vmatmul.mubr.msk.f32.vlgmr.msra.gmra.mrb[8].mxu0 %vm611_vm0, %v907_v30  ;;  %1416 = vmatmul.mubr.msk.f32.vlgmr.msra.gmra.mrb[8].mxu1 %vm611_vm0, %v907_v30 }
 0x185   : > { %1151 = vmatprep.mubr.f32.mxu0 %v1548_v7  ;;  %1228 = vmatprep.mubr.f32.mxu1 %v1548_v7 }
 0x188   : > { %1415 = vmatmul.mubr.msk.f32.gmra.mrb[10].mxu0 %vm611_vm0, %v908_v31  ;;  %1417 = vmatmul.mubr.msk.f32.gmra.mrb[10].mxu1 %vm611_vm0, %v908_v31 }
 0x24f   : > { %v993_v34 = vpop.f32.mrb[4].mxu0  ;;  %v1070_v36 = vpop.f32.mrb[4].mxu1 }
 0x250   : > { %v994_v37 = vadd.f32 %v993_v34, %v914_v33  ;;  %v1071_v38 = vadd.f32 %v1070_v36, %v914_v33  ;;  %v995_v39 = vpop.f32.mrb[5].mxu0  ;;  %v1072_v40 = vpop.f32.mrb[5].mxu1 }
 0x251   : > { %v996_v41 = vadd.f32 %v995_v39, %v914_v33  ;;  %v1073_v42 = vadd.f32 %v1072_v40, %v914_v33 }
 0x252   : > { %v1235_v44 = vmax.f32 %v994_v37, 0.0  ;;  %v1237_v45 = vmax.f32 %v1071_v38, 0.0 }
 0x253   : > { %v1236_v46 = vmax.f32 %v996_v41, 0.0  ;;  %v1238_v7 = vmax.f32 %v1073_v42, 0.0  ;;  %v999_v27 = vpop.f32.mrb[6].mxu0  ;;  %v1076_v32 = vpop.f32.mrb[6].mxu1 }
 0x254   : > { %1251 = vst [vmem:[%s1707_s20] sm:$0xff] %v1235_v44  ;;  %1253 = vst [vmem:[%s1707_s20 + $0x10] sm:$0xff] %v1237_v45  ;;  %v1000_v35 = vadd.f32 %v999_v27, %v919_v43  ;;  %v1077_v47 = vadd.f32 %v1076_v32, %v919_v43  ;;  %v1001_v48 = vpop.f32.mrb[7].mxu0  ;;  %v1078_v49 = vpop.f32.mrb[7].mxu1 }
 0x255   : > { %1252 = vst [vmem:[%s1707_s20 + $0x8] sm:$0xff] %v1236_v46  ;;  %1254 = vst [vmem:[%s1707_s20 + $0x18] sm:$0xff] %v1238_v7  ;;  %v1002_v50 = vadd.f32 %v1001_v48, %v919_v43  ;;  %v1079_v51 = vadd.f32 %v1078_v49, %v919_v43 }
 0x256   : > { %v1243_v52 = vmax.f32 %v1000_v35, 0.0  ;;  %v1245_v53 = vmax.f32 %v1077_v47, 0.0 }
 0x257   : > { %v1244_v54 = vmax.f32 %v1002_v50, 0.0  ;;  %v1246_v55 = vmax.f32 %v1079_v51, 0.0  ;;  %v1147_v56 = vpop.f32.mrb[8].mxu0  ;;  %v1224_v57 = vpop.f32.mrb[8].mxu1 }
 0x258   : > { %1259 = vst [vmem:[%s1707_s20 + $0x40] sm:$0xff] %v1243_v52  ;;  %1261 = vst [vmem:[%s1707_s20 + $0x50] sm:$0xff] %v1245_v53  ;;  %v1148_v58 = vadd.f32 %v1147_v56, %v914_v33  ;;  %v1225_v59 = vadd.f32 %v1224_v57, %v914_v33  ;;  %v1149_v60 = vpop.f32.mrb[9].mxu0  ;;  %v1226_v61 = vpop.f32.mrb[9].mxu1 }
 0x259   : > { %1260 = vst [vmem:[%s1707_s20 + $0x48] sm:$0xff] %v1244_v54  ;;  %1262 = vst [vmem:[%s1707_s20 + $0x58] sm:$0xff] %v1246_v55  ;;  %v1150_v62 = vadd.f32 %v1149_v60, %v914_v33  ;;  %v1227_v63 = vadd.f32 %v1226_v61, %v914_v33 }
 0x25a   : > { %v1239_v0 = vmax.f32 %v1148_v58, 0.0  ;;  %v1241_v1 = vmax.f32 %v1225_v59, 0.0 }
 0x25b   : > { %v1240_v2 = vmax.f32 %v1150_v62, 0.0  ;;  %v1242_v3 = vmax.f32 %v1227_v63, 0.0  ;;  %v1153_v4 = vpop.f32.mrb[10].mxu0  ;;  %v1230_v5 = vpop.f32.mrb[10].mxu1  ;;  %1273 = sbr.rel (!%p1635_p5) target bundleno = 618 (0x26a), region = 52  ;;  %v1291_v19 = vld [vmem:[%s1707_s20] sm:$0xff] (%p1635_p5) }
 0x25c   : > { %1255 = vst [vmem:[%s1707_s20 + $0x20] sm:$0xff] %v1239_v0  ;;  %1257 = vst [vmem:[%s1707_s20 + $0x30] sm:$0xff] %v1241_v1  ;;  %v1154_v6 = vadd.f32 %v1153_v4, %v919_v43  ;;  %v1231_v8 = vadd.f32 %v1230_v5, %v919_v43  ;;  %v1155_v9 = vpop.f32.mrb[11].mxu0  ;;  %v1232_v10 = vpop.f32.mrb[11].mxu1  ;;  %v1293_v20 = vld [vmem:[%s1707_s20 + $0x8] sm:$0xff] (%p1635_p5)  ;;  %v1295_v21 = vld [vmem:[%s1707_s20 + $0x10] sm:$0xff] (%p1635_p5) }
 0x25d   : > { %1256 = vst [vmem:[%s1707_s20 + $0x28] sm:$0xff] %v1240_v2  ;;  %1258 = vst [vmem:[%s1707_s20 + $0x38] sm:$0xff] %v1242_v3  ;;  %v1156_v11 = vadd.f32 %v1155_v9, %v919_v43  ;;  %v1233_v12 = vadd.f32 %v1232_v10, %v919_v43  ;;  %v1297_v22 = vld [vmem:[%s1707_s20 + $0x18] sm:$0xff] (%p1635_p5) }
 0x25e   : > { %v1247_v13 = vmax.f32 %v1154_v6, 0.0  ;;  %v1249_v16 = vmax.f32 %v1231_v8, 0.0  ;;  %1292 = vst [vmem:[%s1278_s23] sm:$0xff] (%p1635_p5), %v1291_v19  ;;  %1294 = vst [vmem:[%s1278_s23 + $0x8] sm:$0xff] (%p1635_p5), %v1293_v20 }
 0x25f   : > { %v1248_v17 = vmax.f32 %v1156_v11, 0.0  ;;  %v1250_v18 = vmax.f32 %v1233_v12, 0.0  ;;  %v1307_v15 = vld [vmem:[%s1707_s20 + $0x40] sm:$0xff] (%p1635_p5)  ;;  %v1311_v26 = vld [vmem:[%s1707_s20 + $0x50] sm:$0xff] (%p1635_p5)  ;;  %1296 = vst [vmem:[%s1278_s23 + $0x10] sm:$0xff] (%p1635_p5), %v1295_v21  ;;  %1298 = vst [vmem:[%s1278_s23 + $0x18] sm:$0xff] (%p1635_p5), %v1297_v22 }
 0x260   : > { %1263 = vst [vmem:[%s1707_s20 + $0x60] sm:$0xff] %v1247_v13  ;;  %1265 = vst [vmem:[%s1707_s20 + $0x70] sm:$0xff] %v1249_v16  ;;  %v1309_v25 = vld [vmem:[%s1707_s20 + $0x48] sm:$0xff] (%p1635_p5)  ;;  %v1313_v28 = vld [vmem:[%s1707_s20 + $0x58] sm:$0xff] (%p1635_p5) }
 0x261   : > { %1264 = vst [vmem:[%s1707_s20 + $0x68] sm:$0xff] %v1248_v17  ;;  %1266 = vst [vmem:[%s1707_s20 + $0x78] sm:$0xff] %v1250_v18 }
 0x262   : > { %1308 = vst [vmem:[%s1278_s23 + $0x80] sm:$0xff] %v1307_v15  ;;  %1310 = vst [vmem:[%s1278_s23 + $0x88] sm:$0xff] %v1309_v25 }
 0x263   : > { %v1299_v23 = vld [vmem:[%s1707_s20 + $0x20] sm:$0xff]  ;;  %v1303_v30 = vld [vmem:[%s1707_s20 + $0x30] sm:$0xff]  ;;  %1312 = vst [vmem:[%s1278_s23 + $0x90] sm:$0xff] %v1311_v26  ;;  %1314 = vst [vmem:[%s1278_s23 + $0x98] sm:$0xff] %v1313_v28 }
 0x264   : > { %v1301_v24 = vld [vmem:[%s1707_s20 + $0x28] sm:$0xff]  ;;  %v1305_v14 = vld [vmem:[%s1707_s20 + $0x38] sm:$0xff]  ;;  %1300 = vst [vmem:[%s1278_s23 + $0x20] sm:$0xff] %v1299_v23  ;;  %1304 = vst [vmem:[%s1278_s23 + $0x30] sm:$0xff] %v1303_v30 }
 0x265   : > { %1302 = vst [vmem:[%s1278_s23 + $0x28] sm:$0xff] %v1301_v24  ;;  %1306 = vst [vmem:[%s1278_s23 + $0x38] sm:$0xff] %v1305_v14 }
 0x267   : > { %v1315_v29 = vld [vmem:[%s1707_s20 + $0x60] sm:$0xff]  ;;  %v1319_v33 = vld [vmem:[%s1707_s20 + $0x70] sm:$0xff] }
 0x268   : > { %v1317_v31 = vld [vmem:[%s1707_s20 + $0x68] sm:$0xff]  ;;  %1316 = vst [vmem:[%s1278_s23 + $0xa0] sm:$0xff] %v1315_v29  ;;  %1320 = vst [vmem:[%s1278_s23 + $0xb0] sm:$0xff] %v1319_v33  ;;  %v1321_v34 = vld [vmem:[%s1707_s20 + $0x78] sm:$0xff] }
 0x269   : > { %1318 = vst [vmem:[%s1278_s23 + $0xa8] sm:$0xff] %v1317_v31  ;;  %1322 = vst [vmem:[%s1278_s23 + $0xb8] sm:$0xff] %v1321_v34 }
 0x26a PF: > { %s17_s30 = sadd.s32 1, %s1543_s30   ;;  %s1778_s24 = smov %s1523_s25 }
 0x26b   : > { %p14_p11 = scmp.ge.s32.totalorder %s17_s30, 6   ;;  %s1779_s25 = smov %s1646_s16 }
 0x26c   : > { %s1780_s26 = smov %s1535_s28  ;;  %s1781_s27 = smov %s1539_s29 }
 0x26d   : > { %s1782_s28 = smov %s1785_s8  ;;  %s1783_s29 = smov %s1789_s9 }
 0x26e   :  { %16 = sbr.rel (!%p14_p11) target bundleno = 4 (0x4), region = 101 }

</bundles_post_ra>
